<compile_context>
chip_gen: v6e
topology: v6e:2x2x1
jax: 0.10.0
libtpu: 0.0.40
codegen_flags: <defaults>
</compile_context>

<pallas_src>
import functools

import jax
import jax.numpy as jnp
from jax.experimental import pallas as pl
from jax.experimental.pallas import tpu as pltpu

DELTA = 0.7        # BinaryTverskyLoss(delta=0.7, ...)
SMOOTH = 1e-5      # smooth used inside BinaryTverskyLoss
TARGET_BLOCK_ELEMS = 256 * 1024   # ~1 MiB f32 per input block
G_TILE_CAP = 512                  # bound leading-axis reduction length
PAD_LOGIT = -40.0                 # sigmoid/BCE contribution ~4e-18 -> negligible


def _tversky_bce_kernel(p_ref, t_ref, o_ref, acc_ref, *, h5, w5, h7, w7):
    """Accumulates the 7 global sums for one (g_tile, h_tile, W) block."""
    g = pl.program_id(1)
    hh = pl.program_id(2)
    is_first = jnp.logical_and(g == 0, hh == 0)
    is_last = jnp.logical_and(g == pl.num_programs(1) - 1,
                              hh == pl.num_programs(2) - 1)

    @pl.when(is_first)
    def _():
        for j in range(8):
            acc_ref[j] = jnp.float32(0.0)

    x = p_ref[...].astype(jnp.float32)        # logits,  (g_tile, h_tile, W)
    y = t_ref[...].astype(jnp.float32)        # targets, (g_tile, h_tile, W)
    _, h_tile, w = x.shape

    # One exp feeds both sigmoid and the numerically-stable BCE term.
    e = jnp.exp(-jnp.abs(x))                  # EUP
    one_plus_e = 1.0 + e
    p_abs = 1.0 / one_plus_e                  # sigmoid(|x|)  (exact divide)
    p = jnp.where(x >= 0.0, 1.0, e) * p_abs   # sigmoid(x), stable both signs
    # BCEWithLogits: max(x,0) - x*y + log(1 + exp(-|x|))
    bce = jnp.maximum(x, 0.0) - x * y + jnp.log(one_plus_e)

    # Reduce the (b, c) block axis first: masks only depend on (h, w), so all
    # masked products / final reductions run on small 2-D planes.
    py_g = jnp.sum(p * y, axis=0)             # (h_tile, W)
    p_g = jnp.sum(p, axis=0)
    y_g = jnp.sum(y, axis=0)
    bce_g = jnp.sum(bce, axis=0)

    h_base = hh * h_tile
    h_ids = jax.lax.broadcasted_iota(jnp.int32, (h_tile, w), 0) + h_base
    w_ids = jax.lax.broadcasted_iota(jnp.int32, (h_tile, w), 1)
    m5 = ((h_ids < h5) & (w_ids < w5)).astype(jnp.float32)
    m7 = ((h_ids < h7) & (w_ids < w7)).astype(jnp.float32)

    acc_ref[0] += jnp.sum(py_g * m5)          # TP   (5x5 crop)
    acc_ref[1] += jnp.sum(p_g * m5)           # sum P
    acc_ref[2] += jnp.sum(y_g * m5)           # sum y
    acc_ref[3] += jnp.sum(py_g * m7)          # TP   (7x7 crop)
    acc_ref[4] += jnp.sum(p_g * m7)
    acc_ref[5] += jnp.sum(y_g * m7)
    acc_ref[6] += jnp.sum(bce_g)              # BCE sum (all elements)

    @pl.when(is_last)
    def _():
        # Single lane-dense full-block vector store of the partials.
        rows = jax.lax.broadcasted_iota(jnp.int32, (8, 128), 0)
        out = jnp.zeros((8, 128), jnp.float32)
        for j in range(7):
            out = jnp.where(rows == j, acc_ref[j], out)
        o_ref[...] = out[None]


def patch_binary_tversky_loss(logit, target, *, delta=DELTA, smooth=SMOOTH,
                              target_block_elems=TARGET_BLOCK_ELEMS):
    assert logit.shape == target.shape and logit.ndim == 4
    B, C, H, W = logit.shape
    BC = B * C
    total = BC * H * W

    # Crop extents equivalent to torch .unfold(size, step=size).
    h5, w5 = 5 * (H // 5), 5 * (W // 5)
    h7, w7 = 7 * (H // 7), 7 * (W // 7)

    # --- tile selection: big blocks, last dim = full W (lane axis) ----------
    if H % 8 == 0 and H * W > target_block_elems:
        h_tile = 8
        for cand in range(8, H + 1, 8):
            if H % cand == 0 and cand * W <= target_block_elems:
                h_tile = cand
    else:
        h_tile = H                             # full H (block dim == array dim)
    n_h = H // h_tile
    g_tile = max(1, min(BC, G_TILE_CAP, target_block_elems // (h_tile * W)))
    n_g_chunks = -(-BC // g_tile)
    n_split = 2 if n_g_chunks >= 2 else 1      # feed both TensorCores on v7x
    n_g = -(-n_g_chunks // n_split)
    bc_pad = n_split * n_g * g_tile

    # TODO(synk): for very small W the lane axis is under-occupied and for
    # H % 8 != 0 with huge H*W a single block may exceed VMEM; packing (H, W)
    # into 128-wide lanes would need vector integer div/mod for the masks.

    p3 = logit.reshape(BC, H, W)
    t3 = target.reshape(BC, H, W)
    if bc_pad != BC:
        pad = bc_pad - BC
        # Padded rows: sigmoid(-40) ~ 4e-18, BCE(-40, 0) ~ 4e-18 -> no impact.
        p3 = jnp.pad(p3, ((0, pad), (0, 0), (0, 0)), constant_values=PAD_LOGIT)
        t3 = jnp.pad(t3, ((0, pad), (0, 0), (0, 0)))

    kernel = functools.partial(_tversky_bce_kernel, h5=h5, w5=w5, h7=h7, w7=w7)

    in_map = lambda c, g, h: (c * n_g + g, h, 0)
    out_map = lambda c, g, h: (c, 0, 0)

    bytes_in = total * (p3.dtype.itemsize + t3.dtype.itemsize)
    cost = pl.CostEstimate(flops=20 * total, transcendentals=3 * total,
                           bytes_accessed=bytes_in + n_split * 8 * 128 * 4)

    partials = pl.pallas_call(
        kernel,
        out_shape=jax.ShapeDtypeStruct((n_split, 8, 128), jnp.float32),
        grid_spec=pltpu.PrefetchScalarGridSpec(
            num_scalar_prefetch=0,
            grid=(n_split, n_g, n_h),
            in_specs=[
                pl.BlockSpec((g_tile, h_tile, W), in_map),
                pl.BlockSpec((g_tile, h_tile, W), in_map),
            ],
            out_specs=pl.BlockSpec((1, 8, 128), out_map),
            scratch_shapes=[pltpu.SMEM((8,), jnp.float32)],
        ),
        compiler_params=pltpu.CompilerParams(
            dimension_semantics=("parallel", "arbitrary", "arbitrary"),
            vmem_limit_bytes=32 * 1024 * 1024,
        ),
        cost_estimate=cost,
    )(p3, t3)

    sums = jnp.sum(partials[:, :, 0], axis=0)          # combine core splits
    tp5, sp5, sy5, tp7, sp7, sy7, bce_sum = [sums[i] for i in range(7)]

    def tversky(tp, sp, sy):
        fp = sp - tp                                   # sum P*(1-y)
        fn = sy - tp                                   # sum (1-P)*y
        den = tp + delta * fp + (1.0 - delta) * fn
        return 1.0 - tp / (den + smooth)

    loss5 = tversky(tp5, sp5, sy5)
    loss7 = tversky(tp7, sp7, sy7)
    bce = bce_sum / total
    tversky_total = loss5 + loss7
    return tversky_total + 2.0 * bce, tversky_total, bce


def _reference(logit, target, delta=DELTA, smooth=SMOOTH):
    """Pure-JAX mirror of the PyTorch module."""
    _, _, H, W = logit.shape

    def tversky(x, y):
        p = jax.nn.sigmoid(x.astype(jnp.float32)).reshape(-1)
        m = y.astype(jnp.float32).reshape(-1)
        tp = jnp.sum(p * m)
        fp = jnp.sum(p * (1.0 - m))
        fn = jnp.sum((1.0 - p) * m)
        den = tp + delta * fp + (1.0 - delta) * fn
        return 1.0 - tp / (den + smooth)

    h5, w5 = 5 * (H // 5), 5 * (W // 5)
    h7, w7 = 7 * (H // 7), 7 * (W // 7)
    l5 = tversky(logit[:, :, :h5, :w5], target[:, :, :h5, :w5])
    l7 = tversky(logit[:, :, :h7, :w7], target[:, :, :h7, :w7])
    x = logit.astype(jnp.float32)
    y = target.astype(jnp.float32)
    bce = jnp.mean(jnp.maximum(x, 0.0) - x * y + jnp.log1p(jnp.exp(-jnp.abs(x))))
    return l5 + l7 + 2.0 * bce, l5 + l7, bce


if __name__ == "__main__":
    key = jax.random.PRNGKey(0)
    k1, k2 = jax.random.split(key)
    B, C, H, W = 2, 4, 16, 16
    logit = jax.random.normal(k1, (B, C, H, W), dtype=jnp.float32)
    target = (jax.random.uniform(k2, (B, C, H, W)) > 0.5).astype(jnp.float32)

    total_l, tversky_l, bce_l = patch_binary_tversky_loss(logit, target)
    total_l = jax.block_until_ready(total_l)

    ref_total, ref_tversky, ref_bce = _reference(logit, target)
    assert jnp.allclose(total_l, ref_total, atol=1e-4, rtol=1e-5), (total_l, ref_total)
    assert jnp.allclose(tversky_l, ref_tversky, atol=1e-4, rtol=1e-5), (tversky_l, ref_tversky)
    assert jnp.allclose(bce_l, ref_bce, atol=1e-4, rtol=1e-5), (bce_l, ref_bce)
    print("KERNEL_OK")
</pallas_src>

<mosaic_0001>
module attributes {stable_mosaic.version = 11 : i64} {
  func.func @_tversky_bce_kernel(%arg0: i32, %arg1: i32, %arg2: i32, %arg3: memref<8x16x16xf32, #tpu.memory_space<vmem>>, %arg4: memref<8x16x16xf32, #tpu.memory_space<vmem>>, %arg5: memref<1x8x128xf32, #tpu.memory_space<vmem>>, %arg6: memref<8xf32, #tpu.memory_space<smem>>) attributes {dimension_semantics = [#tpu.dimension_semantics<parallel>, #tpu.dimension_semantics<arbitrary>, #tpu.dimension_semantics<arbitrary>], iteration_bounds = array<i64: 1, 1, 1>, scalar_prefetch = 0 : i64, scratch_operands = 1 : i64, tpu.core_type = #tpu.core_type<tc>, window_params = [{transform_indices = @transform_0, window_bounds = array<i64: 8, 16, 16>}, {transform_indices = @transform_1, window_bounds = array<i64: 8, 16, 16>}, {transform_indices = @transform_2, window_bounds = array<i64: 1, 8, 128>}]} {
    %c0_i32 = arith.constant 0 : i32
    %0 = arith.cmpi eq, %arg1, %c0_i32 : i32
    %c0_i32_0 = arith.constant 0 : i32
    %1 = arith.cmpi eq, %arg2, %c0_i32_0 : i32
    %2 = arith.andi %0, %1 : i1
    %c0_i32_1 = arith.constant 0 : i32
    %3 = arith.cmpi eq, %arg1, %c0_i32_1 : i32
    %c0_i32_2 = arith.constant 0 : i32
    %4 = arith.cmpi eq, %arg2, %c0_i32_2 : i32
    %5 = arith.andi %3, %4 : i1
    %6 = arith.extui %2 : i1 to i32
    %c0_i32_3 = arith.constant 0 : i32
    %7 = arith.cmpi ne, %6, %c0_i32_3 : i32
    scf.if %7 {
      %cst_36 = arith.constant 0.000000e+00 : f32
      %c0_37 = arith.constant 0 : index
      %110 = memref.load %arg6[%c0_37] : memref<8xf32, #tpu.memory_space<smem>>
      memref.store %cst_36, %arg6[%c0_37] : memref<8xf32, #tpu.memory_space<smem>>
      %cst_38 = arith.constant 0.000000e+00 : f32
      %c1_39 = arith.constant 1 : index
      %111 = memref.load %arg6[%c1_39] : memref<8xf32, #tpu.memory_space<smem>>
      memref.store %cst_38, %arg6[%c1_39] : memref<8xf32, #tpu.memory_space<smem>>
      %cst_40 = arith.constant 0.000000e+00 : f32
      %c2_41 = arith.constant 2 : index
      %112 = memref.load %arg6[%c2_41] : memref<8xf32, #tpu.memory_space<smem>>
      memref.store %cst_40, %arg6[%c2_41] : memref<8xf32, #tpu.memory_space<smem>>
      %cst_42 = arith.constant 0.000000e+00 : f32
      %c3_43 = arith.constant 3 : index
      %113 = memref.load %arg6[%c3_43] : memref<8xf32, #tpu.memory_space<smem>>
      memref.store %cst_42, %arg6[%c3_43] : memref<8xf32, #tpu.memory_space<smem>>
      %cst_44 = arith.constant 0.000000e+00 : f32
      %c4_45 = arith.constant 4 : index
      %114 = memref.load %arg6[%c4_45] : memref<8xf32, #tpu.memory_space<smem>>
      memref.store %cst_44, %arg6[%c4_45] : memref<8xf32, #tpu.memory_space<smem>>
      %cst_46 = arith.constant 0.000000e+00 : f32
      %c5_47 = arith.constant 5 : index
      %115 = memref.load %arg6[%c5_47] : memref<8xf32, #tpu.memory_space<smem>>
      memref.store %cst_46, %arg6[%c5_47] : memref<8xf32, #tpu.memory_space<smem>>
      %cst_48 = arith.constant 0.000000e+00 : f32
      %c6_49 = arith.constant 6 : index
      %116 = memref.load %arg6[%c6_49] : memref<8xf32, #tpu.memory_space<smem>>
      memref.store %cst_48, %arg6[%c6_49] : memref<8xf32, #tpu.memory_space<smem>>
      %cst_50 = arith.constant 0.000000e+00 : f32
      %c7 = arith.constant 7 : index
      %117 = memref.load %arg6[%c7] : memref<8xf32, #tpu.memory_space<smem>>
      memref.store %cst_50, %arg6[%c7] : memref<8xf32, #tpu.memory_space<smem>>
    } else {
    }
    %c0 = arith.constant 0 : index
    %c0_4 = arith.constant 0 : index
    %c0_5 = arith.constant 0 : index
    %8 = vector.load %arg3[%c0, %c0_4, %c0_5] : memref<8x16x16xf32, #tpu.memory_space<vmem>>, vector<8x16x16xf32>
    %c0_6 = arith.constant 0 : index
    %c0_7 = arith.constant 0 : index
    %c0_8 = arith.constant 0 : index
    %9 = vector.load %arg4[%c0_6, %c0_7, %c0_8] : memref<8x16x16xf32, #tpu.memory_space<vmem>>, vector<8x16x16xf32>
    %10 = math.absf %8 : vector<8x16x16xf32>
    %cst = arith.constant 0.000000e+00 : f32
    %11 = vector.broadcast %cst : f32 to vector<8x16x16xf32>
    %12 = arith.subf %11, %10 : vector<8x16x16xf32>
    %13 = math.exp %12 : vector<8x16x16xf32>
    %cst_9 = arith.constant 1.000000e+00 : f32
    %14 = vector.broadcast %cst_9 : f32 to vector<8x16x16xf32>
    %15 = arith.addf %14, %13 : vector<8x16x16xf32>
    %cst_10 = arith.constant 1.000000e+00 : f32
    %16 = vector.broadcast %cst_10 : f32 to vector<8x16x16xf32>
    %17 = arith.divf %16, %15 : vector<8x16x16xf32>
    %cst_11 = arith.constant 0.000000e+00 : f32
    %18 = vector.broadcast %cst_11 : f32 to vector<8x16x16xf32>
    %19 = arith.cmpf oge, %8, %18 : vector<8x16x16xf32>
    %cst_12 = arith.constant 1.000000e+00 : f32
    %20 = vector.broadcast %cst_12 : f32 to vector<8x16x16xf32>
    %21 = arith.select %19, %20, %13 : vector<8x16x16xi1>, vector<8x16x16xf32>
    %22 = arith.mulf %21, %17 : vector<8x16x16xf32>
    %cst_13 = arith.constant 0.000000e+00 : f32
    %23 = vector.broadcast %cst_13 : f32 to vector<8x16x16xf32>
    %24 = arith.maximumf %8, %23 : vector<8x16x16xf32>
    %25 = arith.mulf %8, %9 : vector<8x16x16xf32>
    %26 = arith.subf %24, %25 : vector<8x16x16xf32>
    %27 = math.log %15 : vector<8x16x16xf32>
    %28 = arith.addf %26, %27 : vector<8x16x16xf32>
    %29 = arith.mulf %22, %9 : vector<8x16x16xf32>
    %cst_14 = arith.constant dense<0.000000e+00> : vector<16x16xf32>
    %30 = vector.multi_reduction <add>, %29, %cst_14 [0] : vector<8x16x16xf32> to vector<16x16xf32>
    %cst_15 = arith.constant dense<0.000000e+00> : vector<16x16xf32>
    %31 = vector.multi_reduction <add>, %22, %cst_15 [0] : vector<8x16x16xf32> to vector<16x16xf32>
    %cst_16 = arith.constant dense<0.000000e+00> : vector<16x16xf32>
    %32 = vector.multi_reduction <add>, %9, %cst_16 [0] : vector<8x16x16xf32> to vector<16x16xf32>
    %cst_17 = arith.constant dense<0.000000e+00> : vector<16x16xf32>
    %33 = vector.multi_reduction <add>, %28, %cst_17 [0] : vector<8x16x16xf32> to vector<16x16xf32>
    %c16_i32 = arith.constant 16 : i32
    %34 = arith.muli %arg2, %c16_i32 : i32
    %35 = tpu.iota {dimensions = array<i32: 0>} : vector<16x16xi32>
    %36 = vector.broadcast %34 : i32 to vector<16x16xi32>
    %37 = arith.addi %35, %36 : vector<16x16xi32>
    %38 = tpu.iota {dimensions = array<i32: 1>} : vector<16x16xi32>
    %c15_i32 = arith.constant 15 : i32
    %39 = vector.broadcast %c15_i32 : i32 to vector<16x16xi32>
    %40 = arith.cmpi slt, %37, %39 : vector<16x16xi32>
    %c15_i32_18 = arith.constant 15 : i32
    %41 = vector.broadcast %c15_i32_18 : i32 to vector<16x16xi32>
    %42 = arith.cmpi slt, %38, %41 : vector<16x16xi32>
    %43 = arith.andi %40, %42 : vector<16x16xi1>
    %44 = arith.extui %43 : vector<16x16xi1> to vector<16x16xi32>
    %45 = arith.sitofp %44 : vector<16x16xi32> to vector<16x16xf32>
    %c14_i32 = arith.constant 14 : i32
    %46 = vector.broadcast %c14_i32 : i32 to vector<16x16xi32>
    %47 = arith.cmpi slt, %37, %46 : vector<16x16xi32>
    %c14_i32_19 = arith.constant 14 : i32
    %48 = vector.broadcast %c14_i32_19 : i32 to vector<16x16xi32>
    %49 = arith.cmpi slt, %38, %48 : vector<16x16xi32>
    %50 = arith.andi %47, %49 : vector<16x16xi1>
    %51 = arith.extui %50 : vector<16x16xi1> to vector<16x16xi32>
    %52 = arith.sitofp %51 : vector<16x16xi32> to vector<16x16xf32>
    %c0_20 = arith.constant 0 : index
    %53 = memref.load %arg6[%c0_20] : memref<8xf32, #tpu.memory_space<smem>>
    %54 = arith.mulf %30, %45 : vector<16x16xf32>
    %55 = vector.shape_cast %54 : vector<16x16xf32> to vector<1x16x16xf32>
    %cst_21 = arith.constant dense<0.000000e+00> : vector<1xf32>
    %56 = vector.multi_reduction <add>, %55, %cst_21 [1, 2] : vector<1x16x16xf32> to vector<1xf32>
    %57 = vector.shape_cast %56 : vector<1xf32> to vector<1x1x1xf32>
    %58 = vector.extract %57[0, 0, 0] : f32 from vector<1x1x1xf32>
    %59 = arith.addf %53, %58 : f32
    %c0_22 = arith.constant 0 : index
    %60 = memref.load %arg6[%c0_22] : memref<8xf32, #tpu.memory_space<smem>>
    memref.store %59, %arg6[%c0_22] : memref<8xf32, #tpu.memory_space<smem>>
    %c1 = arith.constant 1 : index
    %61 = memref.load %arg6[%c1] : memref<8xf32, #tpu.memory_space<smem>>
    %62 = arith.mulf %31, %45 : vector<16x16xf32>
    %63 = vector.shape_cast %62 : vector<16x16xf32> to vector<1x16x16xf32>
    %cst_23 = arith.constant dense<0.000000e+00> : vector<1xf32>
    %64 = vector.multi_reduction <add>, %63, %cst_23 [1, 2] : vector<1x16x16xf32> to vector<1xf32>
    %65 = vector.shape_cast %64 : vector<1xf32> to vector<1x1x1xf32>
    %66 = vector.extract %65[0, 0, 0] : f32 from vector<1x1x1xf32>
    %67 = arith.addf %61, %66 : f32
    %c1_24 = arith.constant 1 : index
    %68 = memref.load %arg6[%c1_24] : memref<8xf32, #tpu.memory_space<smem>>
    memref.store %67, %arg6[%c1_24] : memref<8xf32, #tpu.memory_space<smem>>
    %c2 = arith.constant 2 : index
    %69 = memref.load %arg6[%c2] : memref<8xf32, #tpu.memory_space<smem>>
    %70 = arith.mulf %32, %45 : vector<16x16xf32>
    %71 = vector.shape_cast %70 : vector<16x16xf32> to vector<1x16x16xf32>
    %cst_25 = arith.constant dense<0.000000e+00> : vector<1xf32>
    %72 = vector.multi_reduction <add>, %71, %cst_25 [1, 2] : vector<1x16x16xf32> to vector<1xf32>
    %73 = vector.shape_cast %72 : vector<1xf32> to vector<1x1x1xf32>
    %74 = vector.extract %73[0, 0, 0] : f32 from vector<1x1x1xf32>
    %75 = arith.addf %69, %74 : f32
    %c2_26 = arith.constant 2 : index
    %76 = memref.load %arg6[%c2_26] : memref<8xf32, #tpu.memory_space<smem>>
    memref.store %75, %arg6[%c2_26] : memref<8xf32, #tpu.memory_space<smem>>
    %c3 = arith.constant 3 : index
    %77 = memref.load %arg6[%c3] : memref<8xf32, #tpu.memory_space<smem>>
    %78 = arith.mulf %30, %52 : vector<16x16xf32>
    %79 = vector.shape_cast %78 : vector<16x16xf32> to vector<1x16x16xf32>
    %cst_27 = arith.constant dense<0.000000e+00> : vector<1xf32>
    %80 = vector.multi_reduction <add>, %79, %cst_27 [1, 2] : vector<1x16x16xf32> to vector<1xf32>
    %81 = vector.shape_cast %80 : vector<1xf32> to vector<1x1x1xf32>
    %82 = vector.extract %81[0, 0, 0] : f32 from vector<1x1x1xf32>
    %83 = arith.addf %77, %82 : f32
    %c3_28 = arith.constant 3 : index
    %84 = memref.load %arg6[%c3_28] : memref<8xf32, #tpu.memory_space<smem>>
    memref.store %83, %arg6[%c3_28] : memref<8xf32, #tpu.memory_space<smem>>
    %c4 = arith.constant 4 : index
    %85 = memref.load %arg6[%c4] : memref<8xf32, #tpu.memory_space<smem>>
    %86 = arith.mulf %31, %52 : vector<16x16xf32>
    %87 = vector.shape_cast %86 : vector<16x16xf32> to vector<1x16x16xf32>
    %cst_29 = arith.constant dense<0.000000e+00> : vector<1xf32>
    %88 = vector.multi_reduction <add>, %87, %cst_29 [1, 2] : vector<1x16x16xf32> to vector<1xf32>
    %89 = vector.shape_cast %88 : vector<1xf32> to vector<1x1x1xf32>
    %90 = vector.extract %89[0, 0, 0] : f32 from vector<1x1x1xf32>
    %91 = arith.addf %85, %90 : f32
    %c4_30 = arith.constant 4 : index
    %92 = memref.load %arg6[%c4_30] : memref<8xf32, #tpu.memory_space<smem>>
    memref.store %91, %arg6[%c4_30] : memref<8xf32, #tpu.memory_space<smem>>
    %c5 = arith.constant 5 : index
    %93 = memref.load %arg6[%c5] : memref<8xf32, #tpu.memory_space<smem>>
    %94 = arith.mulf %32, %52 : vector<16x16xf32>
    %95 = vector.shape_cast %94 : vector<16x16xf32> to vector<1x16x16xf32>
    %cst_31 = arith.constant dense<0.000000e+00> : vector<1xf32>
    %96 = vector.multi_reduction <add>, %95, %cst_31 [1, 2] : vector<1x16x16xf32> to vector<1xf32>
    %97 = vector.shape_cast %96 : vector<1xf32> to vector<1x1x1xf32>
    %98 = vector.extract %97[0, 0, 0] : f32 from vector<1x1x1xf32>
    %99 = arith.addf %93, %98 : f32
    %c5_32 = arith.constant 5 : index
    %100 = memref.load %arg6[%c5_32] : memref<8xf32, #tpu.memory_space<smem>>
    memref.store %99, %arg6[%c5_32] : memref<8xf32, #tpu.memory_space<smem>>
    %c6 = arith.constant 6 : index
    %101 = memref.load %arg6[%c6] : memref<8xf32, #tpu.memory_space<smem>>
    %102 = vector.shape_cast %33 : vector<16x16xf32> to vector<1x16x16xf32>
    %cst_33 = arith.constant dense<0.000000e+00> : vector<1xf32>
    %103 = vector.multi_reduction <add>, %102, %cst_33 [1, 2] : vector<1x16x16xf32> to vector<1xf32>
    %104 = vector.shape_cast %103 : vector<1xf32> to vector<1x1x1xf32>
    %105 = vector.extract %104[0, 0, 0] : f32 from vector<1x1x1xf32>
    %106 = arith.addf %101, %105 : f32
    %c6_34 = arith.constant 6 : index
    %107 = memref.load %arg6[%c6_34] : memref<8xf32, #tpu.memory_space<smem>>
    memref.store %106, %arg6[%c6_34] : memref<8xf32, #tpu.memory_space<smem>>
    %108 = arith.extui %5 : i1 to i32
    %c0_i32_35 = arith.constant 0 : i32
    %109 = arith.cmpi ne, %108, %c0_i32_35 : i32
    scf.if %109 {
      %110 = tpu.iota {dimensions = array<i32: 0>} : vector<8x128xi32>
      %cst_36 = arith.constant 0.000000e+00 : f32
      %111 = vector.broadcast %cst_36 : f32 to vector<8x128xf32>
      %c0_i32_37 = arith.constant 0 : i32
      %112 = vector.broadcast %c0_i32_37 : i32 to vector<8x128xi32>
      %113 = arith.cmpi eq, %110, %112 : vector<8x128xi32>
      %c0_38 = arith.constant 0 : index
      %114 = memref.load %arg6[%c0_38] : memref<8xf32, #tpu.memory_space<smem>>
      %115 = vector.broadcast %114 : f32 to vector<8x128xf32>
      %116 = arith.select %113, %115, %111 : vector<8x128xi1>, vector<8x128xf32>
      %c1_i32 = arith.constant 1 : i32
      %117 = vector.broadcast %c1_i32 : i32 to vector<8x128xi32>
      %118 = arith.cmpi eq, %110, %117 : vector<8x128xi32>
      %c1_39 = arith.constant 1 : index
      %119 = memref.load %arg6[%c1_39] : memref<8xf32, #tpu.memory_space<smem>>
      %120 = vector.broadcast %119 : f32 to vector<8x128xf32>
      %121 = arith.select %118, %120, %116 : vector<8x128xi1>, vector<8x128xf32>
      %c2_i32 = arith.constant 2 : i32
      %122 = vector.broadcast %c2_i32 : i32 to vector<8x128xi32>
      %123 = arith.cmpi eq, %110, %122 : vector<8x128xi32>
      %c2_40 = arith.constant 2 : index
      %124 = memref.load %arg6[%c2_40] : memref<8xf32, #tpu.memory_space<smem>>
      %125 = vector.broadcast %124 : f32 to vector<8x128xf32>
      %126 = arith.select %123, %125, %121 : vector<8x128xi1>, vector<8x128xf32>
      %c3_i32 = arith.constant 3 : i32
      %127 = vector.broadcast %c3_i32 : i32 to vector<8x128xi32>
      %128 = arith.cmpi eq, %110, %127 : vector<8x128xi32>
      %c3_41 = arith.constant 3 : index
      %129 = memref.load %arg6[%c3_41] : memref<8xf32, #tpu.memory_space<smem>>
      %130 = vector.broadcast %129 : f32 to vector<8x128xf32>
      %131 = arith.select %128, %130, %126 : vector<8x128xi1>, vector<8x128xf32>
      %c4_i32 = arith.constant 4 : i32
      %132 = vector.broadcast %c4_i32 : i32 to vector<8x128xi32>
      %133 = arith.cmpi eq, %110, %132 : vector<8x128xi32>
      %c4_42 = arith.constant 4 : index
      %134 = memref.load %arg6[%c4_42] : memref<8xf32, #tpu.memory_space<smem>>
      %135 = vector.broadcast %134 : f32 to vector<8x128xf32>
      %136 = arith.select %133, %135, %131 : vector<8x128xi1>, vector<8x128xf32>
      %c5_i32 = arith.constant 5 : i32
      %137 = vector.broadcast %c5_i32 : i32 to vector<8x128xi32>
      %138 = arith.cmpi eq, %110, %137 : vector<8x128xi32>
      %c5_43 = arith.constant 5 : index
      %139 = memref.load %arg6[%c5_43] : memref<8xf32, #tpu.memory_space<smem>>
      %140 = vector.broadcast %139 : f32 to vector<8x128xf32>
      %141 = arith.select %138, %140, %136 : vector<8x128xi1>, vector<8x128xf32>
      %c6_i32 = arith.constant 6 : i32
      %142 = vector.broadcast %c6_i32 : i32 to vector<8x128xi32>
      %143 = arith.cmpi eq, %110, %142 : vector<8x128xi32>
      %c6_44 = arith.constant 6 : index
      %144 = memref.load %arg6[%c6_44] : memref<8xf32, #tpu.memory_space<smem>>
      %145 = vector.broadcast %144 : f32 to vector<8x128xf32>
      %146 = arith.select %143, %145, %141 : vector<8x128xi1>, vector<8x128xf32>
      %147 = vector.shape_cast %146 : vector<8x128xf32> to vector<1x8x128xf32>
      %c0_45 = arith.constant 0 : index
      %c0_46 = arith.constant 0 : index
      %c0_47 = arith.constant 0 : index
      %148 = vector.load %arg5[%c0_45, %c0_46, %c0_47] : memref<1x8x128xf32, #tpu.memory_space<vmem>>, vector<1x8x128xf32>
      tpu.vector_store %arg5[%c0_45, %c0_46, %c0_47], %147 {strides = array<i32>} : memref<1x8x128xf32, #tpu.memory_space<vmem>>, vector<1x8x128xf32>,
    } else {
    }
    return
  }
  func.func @transform_0(%arg0: i32, %arg1: i32, %arg2: i32) -> (i32, i32, i32) {
    %c1_i32 = arith.constant 1 : i32
    %0 = arith.muli %arg0, %c1_i32 : i32
    %1 = arith.addi %0, %arg1 : i32
    %c0_i32 = arith.constant 0 : i32
    %c0_i32_0 = arith.constant 0 : i32
    return %1, %arg2, %c0_i32 : i32, i32, i32
  }
  func.func @transform_1(%arg0: i32, %arg1: i32, %arg2: i32) -> (i32, i32, i32) {
    %c1_i32 = arith.constant 1 : i32
    %0 = arith.muli %arg0, %c1_i32 : i32
    %1 = arith.addi %0, %arg1 : i32
    %c0_i32 = arith.constant 0 : i32
    %c0_i32_0 = arith.constant 0 : i32
    return %1, %arg2, %c0_i32 : i32, i32, i32
  }
  func.func @transform_2(%arg0: i32, %arg1: i32, %arg2: i32) -> (i32, i32, i32) {
    %c0_i32 = arith.constant 0 : i32
    %c0_i32_0 = arith.constant 0 : i32
    %c0_i32_1 = arith.constant 0 : i32
    return %arg0, %c0_i32, %c0_i32_0 : i32, i32, i32
  }
}

</mosaic_0001>

<bundles_post_ra>
// kernel: tpu_custom_call.1
= control target key start
LH: loop header
LB: loop body
LE: loop exit
PB: predicated region body
PF: predicated region fallthrough
CT: control target
= control target key end

     0   :  { %7 = vsyncpa [#allocation4], 0  ;;  %s1536_s0 = inlined_call_operand.hbm [shape: f32[8,16,16], index: 0, kind: input, shape index: {}]   ;;  %s1537_s1 = inlined_call_operand.hbm [shape: f32[8,16,16], index: 1, kind: input, shape index: {}]   ;;  %s1538_s2 = inlined_call_operand.hbm [shape: f32[1,8,128], index: 2, kind: output, shape index: {}]  }
   0x1   :  { %8 = vsyncpa [#allocation7], 0 }
   0x2   :  { %9 = vsyncpa [#allocation5], 0  ;;  %s897_s9 = smov [#allocation3]  }
   0x3   :  { %s20_s10 = sshll.u32 %s897_s9, 4  ;;  %s21_s10 = int_to_ptr.vmem [resolvable:$true] %s20_s10 }
   0x4   :  { %s839_s11 = scalar_lea.vmem %s21_s10, 2048  ;;  %p844_p1 = scmp.lt.s32.totalorder %s21_s10, %s21_s10 }
   0x5   :  { %p840_p0 = scmp.ne.s32.totalorder %s21_s10, %s839_s11  ;;  %p845_p2 = scmp.lt.s32.totalorder %s839_s11, %s839_s11 }
   0x7   :  { %p846_p3 = por %p845_p2, %p844_p1 }
   0x9   :  { %p847_p4 = pnand %p846_p3, %p840_p0 }
   0xb   :  { %850 = shalt.err (!%p847_p4)
}
   0xc   :  { %s898_s12 = smov 128   ;;  %s899_s13 = smov 8  }
   0xd   :  { %26 = dma.hbm_to_vmem [thread:$0]  %s1536_s0, 2048, %s21_s10, [#allocation4], %s898_s12, %s898_s12, %s899_s13  }
   0xe   :  { %s900_s16 = smov [#allocation6]  }
   0xf   :  { %s37_s17 = sshll.u32 %s900_s16, 4  ;;  %s38_s17 = int_to_ptr.vmem [resolvable:$true] %s37_s17 }
  0x10   :  { %s859_s18 = scalar_lea.vmem %s38_s17, 2048  ;;  %p864_p6 = scmp.lt.s32.totalorder %s38_s17, %s38_s17 }
  0x11   :  { %p860_p5 = scmp.ne.s32.totalorder %s38_s17, %s859_s18  ;;  %p865_p7 = scmp.lt.s32.totalorder %s859_s18, %s859_s18 }
  0x13   :  { %p866_p8 = por %p865_p7, %p864_p6 }
  0x15   :  { %p867_p9 = pnand %p866_p8, %p860_p5 }
  0x17   :  { %870 = shalt.err (!%p867_p9)
}
  0x18   :  { %43 = dma.hbm_to_vmem [thread:$0]  %s1537_s1, 2048, %s38_s17, [#allocation7], %s898_s12, %s898_s12, %s899_s13  }
  0x19   :  { %891 = dma.done.wait [#allocation4], 2048  }
  0x1a   :  { %892 = vsyncadd [#allocation4], 4294965248 }
  0x1b   :  { %893 = dma.done.wait [#allocation7], 2048  }
  0x1c   :  { %894 = vsyncadd [#allocation7], 4294965248  ;;  %v502_v0 = vlaneseq  ;;  %vm380_vm1 = vcmask 130048   ;;  %v1539_v3 = vmov 0.0   ;;  %v934_v5 = vld [vmem:[#allocation6] sm:$0xff]  ;;  %v936_v6 = vld [vmem:[#allocation6 + $0x8] sm:$0xff] }
  0x1d   :  { %1571 = vst [vmem:[#allocation13_spill] sm:$0xff] %v934_v5  ;;  %1572 = vst [vmem:[#allocation14_spill] sm:$0xff] %v936_v6  ;;  %v938_v7 = vld [vmem:[#allocation6 + $0x10] sm:$0xff]  ;;  %v944_v9 = vld [vmem:[#allocation6 + $0x18] sm:$0xff]  ;;  %v441_v12 = vsel %vm380_vm1, %v934_v5, 0.0  ;;  %v456_v14 = vsel %vm380_vm1, %v936_v6, 0.0 }
  0x1e   :  { %v924_v1 = vand.u32 127, %v502_v0  ;;  %v926_v2 = vshrl.u32 %v502_v0, 7  ;;  %1573 = vst [vmem:[#allocation15_spill] sm:$0xff] %v938_v7  ;;  %1574 = vst [vmem:[#allocation16_spill] sm:$0xff] %v944_v9  ;;  %v946_v10 = vld [vmem:[#allocation6 + $0x20] sm:$0xff]  ;;  %v948_v11 = vld [vmem:[#allocation6 + $0x28] sm:$0xff] }
  0x1f   :  { %1575 = vst [vmem:[#allocation17_spill] sm:$0xff] %v946_v10  ;;  %1576 = vst [vmem:[#allocation18_spill] sm:$0xff] %v948_v11  ;;  %v442_v13 = vsel %vm380_vm1, %v938_v7, 0.0  ;;  %v956_v15 = vld [vmem:[#allocation6 + $0x30] sm:$0xff]  ;;  %v958_v16 = vld [vmem:[#allocation6 + $0x38] sm:$0xff]  ;;  %v444_v19 = vsel %vm380_vm1, %v946_v10, 0.0 }
  0x20   :  { %1570 = vst [vmem:[#allocation12_spill] sm:$0xff] %v926_v2  ;;  %vm521_vm0 = vcmp.lt.s32.totalorder %v924_v1, 14  ;;  %v941_v8 = vadd.s32 8, %v926_v2  ;;  %vm512_vm2 = vcmp.lt.s32.totalorder %v924_v1, 15  ;;  %1577 = vst [vmem:[#allocation19_spill] sm:$0xff] %v956_v15  ;;  %v960_v17 = vld [vmem:[#allocation6 + $0x40] sm:$0xff]  ;;  %v443_v18 = vadd.f32 %v442_v13, %v441_v12 }
  0x21   :  { %v932_v4 = vsel %vm521_vm0, 1.0, %v1539_v3  ;;  %v457_v20 = vsel %vm380_vm1, %v944_v9, 0.0  ;;  %v459_v21 = vsel %vm380_vm1, %v948_v11, 0.0  ;;  %v968_v22 = vld [vmem:[#allocation6 + $0x48] sm:$0xff]  ;;  %v970_v23 = vld [vmem:[#allocation6 + $0x50] sm:$0xff]  ;;  %v972_v24 = vld [vmem:[#allocation6 + $0x58] sm:$0xff] }
  0x22   :  { %v446_v25 = vsel %vm380_vm1, %v956_v15, 0.0  ;;  %v458_v26 = vadd.f32 %v457_v20, %v456_v14  ;;  %v445_v27 = vadd.f32 %v444_v19, %v443_v18  ;;  %v461_v28 = vsel %vm380_vm1, %v958_v16, 0.0  ;;  %v984_v30 = vld [vmem:[#allocation6 + $0x60] sm:$0xff]  ;;  %v986_v31 = vld [vmem:[#allocation6 + $0x68] sm:$0xff]  ;;  %v995_v36 = vld [vmem:[#allocation6 + $0x70] sm:$0xff]  ;;  %s902_s25 = smov [#allocation8]  }
  0x23   :  { %vm511_vm3 = vcmp.lt.s32.totalorder %v941_v8, 15  ;;  %v982_v29 = vsel %vm512_vm2, 1.0, %v1539_v3  ;;  %v448_v32 = vsel %vm380_vm1, %v960_v17, 0.0  ;;  %v450_v33 = vsel %vm380_vm1, %v970_v23, 0.0  ;;  %v992_v35 = vld [vmem:[#allocation3] sm:$0xff]  ;;  %v1001_v40 = vld [vmem:[#allocation3 + $0x8] sm:$0xff] }
  0x24   :  { %1578 = vst [vmem:[#allocation20_spill] sm:$0xff] %v982_v29  ;;  %v460_v34 = vadd.f32 %v459_v21, %v458_v26  ;;  %vm520_vm4 = vcmp.lt.s32.totalorder %v941_v8, 14  ;;  %v447_v37 = vadd.f32 %v446_v25, %v445_v27  ;;  %v463_v38 = vsel %vm380_vm1, %v968_v22, 0.0  ;;  %v1003_v41 = vld [vmem:[#allocation3 + $0x10] sm:$0xff]  ;;  %v1009_v43 = vld [vmem:[#allocation6 + $0x78] sm:$0xff]  ;;  %v1013_v46 = vld [vmem:[#allocation3 + $0x20] sm:$0xff] }
  0x25   :  { %v465_v39 = vsel %vm380_vm1, %v972_v24, 0.0  ;;  %v1007_v42 = vmul.f32 %v934_v5, %v992_v35  ;;  %v1011_v45 = vld [vmem:[#allocation3 + $0x18] sm:$0xff]  ;;  %v108_v47 = vand.u32 2147483647, %v992_v35  ;;  %v1018_v48 = vmul.f32 %v936_v6, %v1001_v40  ;;  %vm1028_vm5 = vmand %vm511_vm3, %vm512_vm2  ;;  %v1032_v52 = vld [vmem:[#allocation3 + $0x28] sm:$0xff]  ;;  %s689_s26 = sshll.u32 %s902_s25, 4  ;;  %s690_s26 = int_to_ptr.vmem [resolvable:$true] %s689_s26 }
  0x26   :  { %v462_v44 = vadd.f32 %v461_v28, %v460_v34  ;;  %v1022_v49 = vmul.f32 %v938_v7, %v1003_v41  ;;  %v449_v50 = vadd.f32 %v448_v32, %v447_v37  ;;  %v1034_v53 = vld [vmem:[#allocation3 + $0x30] sm:$0xff]  ;;  %v109_v54 = vand.u32 2147483647, %v1001_v40  ;;  %v1049_v60 = vld [vmem:[#allocation3 + $0x38] sm:$0xff]  ;;  %v1051_v61 = vld [vmem:[#allocation3 + $0x40] sm:$0xff]  ;;  %s871_s28 = scalar_lea.vmem %s690_s26, 128  ;;  %p876_p11 = scmp.lt.s32.totalorder %s690_s26, %s690_s26 }
  0x27   :  { %1579 = vst [vmem:[#allocation21_spill] sm:$0xff] %v1007_v42  ;;  %1580 = vst [vmem:[#allocation22_spill] sm:$0xff] %v1018_v48  ;;  %v1039_v55 = vmul.f32 %v944_v9, %v1011_v45  ;;  %v1043_v56 = vmul.f32 %v946_v10, %v1013_v46  ;;  %v452_v57 = vsel %vm380_vm1, %v984_v30, 0.0  ;;  %v454_v58 = vsel %vm380_vm1, %v995_v36, 0.0  ;;  %v1053_v62 = vld [vmem:[#allocation3 + $0x48] sm:$0xff]  ;;  %v1063_v14 = vld [vmem:[#allocation3 + $0x50] sm:$0xff]  ;;  %p872_p10 = scmp.ne.s32.totalorder %s690_s26, %s871_s28  ;;  %p877_p12 = scmp.lt.s32.totalorder %s871_s28, %s871_s28 }
  0x28   :  { %1581 = vst [vmem:[#allocation23_spill] sm:$0xff] %v1022_v49  ;;  %v464_v59 = vadd.f32 %v463_v38, %v462_v44  ;;  %v1057_v63 = vmul.f32 %v948_v11, %v1032_v52  ;;  %v451_v0 = vadd.f32 %v450_v33, %v449_v50  ;;  %v467_v12 = vsel %vm380_vm1, %v986_v31, 0.0  ;;  %v1065_v18 = vld [vmem:[#allocation3 + $0x58] sm:$0xff]  ;;  %v1067_v19 = vld [vmem:[#allocation3 + $0x60] sm:$0xff]  ;;  %v1078_v26 = vld [vmem:[#allocation3 + $0x68] sm:$0xff] }
  0x29   :  { %1584 = vst [vmem:[#allocation24_spill] sm:$0xff] %v1039_v55  ;;  %1585 = vst [vmem:[#allocation25_spill] sm:$0xff] %v1043_v56  ;;  %v469_v13 = vsel %vm380_vm1, %v1009_v43, 0.0  ;;  %v1071_v20 = vmul.f32 %v956_v15, %v1034_v53  ;;  %v1076_v25 = vsel %vm1028_vm5, 1.0, %v1539_v3  ;;  %v1080_v27 = vld [vmem:[#allocation3 + $0x70] sm:$0xff]  ;;  %v124_v32 = vsub.f32 0.0, %v108_v47  ;;  %p878_p13 = por %p877_p12, %p876_p11 }
  0x2a   :  { %1586 = vst [vmem:[#allocation26_spill] sm:$0xff] %v1057_v63  ;;  %v466_v21 = vadd.f32 %v465_v39, %v464_v59  ;;  %1588 = vst [vmem:[#allocation28_spill] sm:$0xff] %v1076_v25  ;;  %v110_v28 = vand.u32 2147483647, %v1003_v41  ;;  %v453_v34 = vadd.f32 %v452_v57, %v451_v0  ;;  %v1091_v37 = vld [vmem:[#allocation3 + $0x78] sm:$0xff]  ;;  %v125_v44 = vsub.f32 0.0, %v109_v54 }
  0x2b   :  { %1587 = vst [vmem:[#allocation27_spill] sm:$0xff] %v1071_v20  ;;  %vm1087_vm6 = vmand %vm520_vm4, %vm521_vm0  ;;  %v111_v38 = vand.u32 2147483647, %v1011_v45  ;;  %v112_v39 = vand.u32 2147483647, %v1013_v46  ;;  %vm220_vm7 = vcmp.ge.f32.partialorder %v992_v35, 0.0  ;;  %p879_p0 = pnand %p878_p13, %p872_p10 }
  0x2c   :  { %1591 = vst [vmem:[#allocation29_spill] sm:$0xff] %v1091_v37  ;;  %v468_v50 = vadd.f32 %v467_v12, %v466_v21  ;;  %v113_v51 = vand.u32 2147483647, %v1032_v52  ;;  %v114_v47 = vand.u32 2147483647, %v1034_v53  ;;  %v1098_v8 = vadd.f32 %v454_v58, %v453_v34 }
  0x2d   :  { %v115_v1 = vand.u32 2147483647, %v1049_v60  ;;  %v116_v59 = vand.u32 2147483647, %v1051_v61  ;;  %v117_v57 = vand.u32 2147483647, %v1053_v62 }
  0x2e   :  { %v118_v0 = vand.u32 2147483647, %v1063_v14  ;;  %v1103_v3 = vadd.f32 %v469_v13, %v468_v50  ;;  %v119_v2 = vand.u32 2147483647, %v1065_v18  ;;  %v120_v54 = vand.u32 2147483647, %v1067_v19 }
  0x2f   :  { %v121_v12 = vand.u32 2147483647, %v1078_v26  ;;  %v565_v21 = vmul.f32 %v982_v29, %v1098_v8  ;;  %v122_v58 = vand.u32 2147483647, %v1080_v27  ;;  %v126_v34 = vsub.f32 0.0, %v110_v28 }
  0x30   :  { %v127_v20 = vsub.f32 0.0, %v111_v38  ;;  %v566_v63 = vmul.f32 %v1076_v25, %v1103_v3  ;;  %v123_v15 = vand.u32 2147483647, %v1091_v37  ;;  %v128_v13 = vsub.f32 0.0, %v112_v39 }
  0x31   :  { %v129_v50 = vsub.f32 0.0, %v113_v51  ;;  %v567_v11 = vsel %vm380_vm1, %v565_v21, 0.0  ;;  %v130_v10 = vsub.f32 0.0, %v114_v47  ;;  %v131_v9 = vsub.f32 0.0, %v115_v1 }
  0x32   :  { %v132_v7 = vsub.f32 0.0, %v116_v59  ;;  %v568_v6 = vsel %vm380_vm1, %v566_v63, 0.0  ;;  %v133_v56 = vsub.f32 0.0, %v117_v57  ;;  %v134_v29 = vsub.f32 0.0, %v118_v0 }
  0x33   :  { %v140_v55 = vmul.f32 1.442695, %v124_v32  ;;  %v569_v5 = vadd.f32 %v568_v6, %v567_v11  ;;  %v142_v28 = vmul.f32 1.442695, %v125_v44  ;;  %v144_v38 = vmul.f32 1.442695, %v126_v34 }
  0x34   :  { %v146_v49 = vmul.f32 1.442695, %v127_v20  ;;  %v135_v48 = vsub.f32 0.0, %v119_v2  ;;  %v136_v25 = vsub.f32 0.0, %v120_v54  ;;  %v148_v42 = vmul.f32 1.442695, %v128_v13 }
  0x35   :  { %735 = vpow2.f32 %v140_v55  ;;  %570 = vadd.xlane.f32.xlu1 %v569_v5  ;;  %v137_v39 = vsub.f32 0.0, %v121_v12  ;;  %v138_v51 = vsub.f32 0.0, %v122_v58  ;;  %v150_v47 = vmul.f32 1.442695, %v129_v50 }
  0x36   :  { %737 = vpow2.f32 %v142_v28  ;;  %v139_v1 = vsub.f32 0.0, %v123_v15  ;;  %v152_v59 = vmul.f32 1.442695, %v130_v10  ;;  %v154_v63 = vmul.f32 1.442695, %v131_v9 }
  0x37   :  { %739 = vpow2.f32 %v144_v38  ;;  %v156_v57 = vmul.f32 1.442695, %v132_v7  ;;  %v158_v32 = vmul.f32 1.442695, %v133_v56  ;;  %v160_v6 = vmul.f32 1.442695, %v134_v29 }
  0x38   :  { %741 = vpow2.f32 %v146_v49  ;;  %v1118_v2 = vmul.f32 %v958_v16, %v1049_v60  ;;  %v1122_v5 = vmul.f32 %v960_v17, %v1051_v61  ;;  %v1126_v11 = vmul.f32 %v968_v22, %v1053_v62 }
  0x39   :  { %743 = vpow2.f32 %v148_v42  ;;  %v1130_v9 = vmul.f32 %v970_v23, %v1063_v14  ;;  %v1134_v7 = vmul.f32 %v972_v24, %v1065_v18  ;;  %v1138_v10 = vmul.f32 %v984_v30, %v1067_v19 }
  0x3a   :  { %745 = vpow2.f32 %v150_v47  ;;  %v1142_v15 = vmul.f32 %v986_v31, %v1078_v26  ;;  %v1146_v29 = vmul.f32 %v995_v36, %v1080_v27  ;;  %v1150_v42 = vmul.f32 %v1009_v43, %v1091_v37 }
  0x3b   :  { %747 = vpow2.f32 %v152_v59  ;;  %v162_v49 = vmul.f32 1.442695, %v135_v48  ;;  %v164_v55 = vmul.f32 1.442695, %v136_v25  ;;  %v166_v56 = vmul.f32 1.442695, %v137_v39 }
  0x3c   :  { %1592 = vst [vmem:[#allocation30_spill] sm:$0xff] %v1146_v29  ;;  %1593 = vst [vmem:[#allocation31_spill] sm:$0xff] %v1150_v42  ;;  %749 = vpow2.f32 %v154_v63  ;;  %v168_v20 = vmul.f32 1.442695, %v138_v51  ;;  %v170_v44 = vmul.f32 1.442695, %v139_v1  ;;  %v619_v0 = vmul.f32 %v932_v4, %v1098_v8 }
  0x3d   :  { %751 = vpow2.f32 %v156_v57  ;;  %vm221_vm8 = vcmp.ge.f32.partialorder %v1001_v40, 0.0  ;;  %vm222_vm9 = vcmp.ge.f32.partialorder %v1003_v41, 0.0  ;;  %vm223_vm10 = vcmp.ge.f32.partialorder %v1011_v45, 0.0 }
  0x3e   :  { %753 = vpow2.f32 %v158_v32  ;;  %vm224_vm11 = vcmp.ge.f32.partialorder %v1013_v46, 0.0  ;;  %vm225_vm12 = vcmp.ge.f32.partialorder %v1032_v52, 0.0  ;;  %vm226_vm13 = vcmp.ge.f32.partialorder %v1034_v53, 0.0 }
  0x3f   :  { %755 = vpow2.f32 %v160_v6  ;;  %vm227_vm14 = vcmp.ge.f32.partialorder %v1049_v60, 0.0  ;;  %vm228_vm15 = vcmp.ge.f32.partialorder %v1051_v61, 0.0  ;;  %vm229_vm0 = vcmp.ge.f32.partialorder %v1053_v62, 0.0 }
  0x40   :  { %757 = vpow2.f32 %v162_v49  ;;  %v1594_v48 = vmov 0.0   ;;  %vm230_vm2 = vcmp.ge.f32.partialorder %v1063_v14, 0.0  ;;  %vm231_vm3 = vcmp.ge.f32.partialorder %v1065_v18, 0.0 }
  0x41   :  { %759 = vpow2.f32 %v164_v55  ;;  %v1165_v25 = vsel %vm1087_vm6, 1.0, %v1594_v48  ;;  %v621_v33 = vsel %vm380_vm1, %v619_v0, 0.0  ;;  %vm232_vm4 = vcmp.ge.f32.partialorder %v1067_v19, 0.0 }
  0x42   :  { %v736_v54 = vpop.eup %735  ;;  %761 = vpow2.f32 %v166_v56  ;;  %v620_v12 = vmul.f32 %v1165_v25, %v1103_v3  ;;  %vm233_vm5 = vcmp.ge.f32.partialorder %v1078_v26, 0.0  ;;  %vm234_vm6 = vcmp.ge.f32.partialorder %v1080_v27, 0.0 }
  0x43   :  { %v738_v58 = vpop.eup %737  ;;  %763 = vpow2.f32 %v168_v20  ;;  %v1173_v34 = vadd.f32 1.0, %v736_v54  ;;  %v1183_v3 = vsel %vm220_vm7, 1.0, %v736_v54  ;;  %vm235_vm7 = vcmp.ge.f32.partialorder %v1091_v37, 0.0 }
  0x44   :  { %v740_v8 = vpop.eup %739  ;;  %765 = vpow2.f32 %v170_v44  ;;  %v1178_v50 = vadd.f32 1.0, %v738_v58  ;;  %v622_v28 = vsel %vm380_vm1, %v620_v12, 0.0  ;;  %v1192_v51 = vsel %vm221_vm8, 1.0, %v738_v58 }
  0x45   :  { %1595 = vst [vmem:[#allocation32_spill] sm:$0xff] %v1173_v34  ;;  %v742_v38 = vpop.eup %741  ;;  %v1186_v39 = vadd.f32 1.0, %v740_v8  ;;  %767 = vrcp.f32 %v1173_v34  ;;  %v1194_v47 = vadd.f32 %v622_v28, %v621_v33  ;;  %v1202_v63 = vsel %vm222_vm9, 1.0, %v740_v8 }
  0x46   :  { %1596 = vst [vmem:[#allocation33_spill] sm:$0xff] %v1178_v50  ;;  %v744_v1 = vpop.eup %743  ;;  %v1196_v59 = vadd.f32 1.0, %v742_v38  ;;  %769 = vrcp.f32 %v1178_v50  ;;  %v1206_v57 = vsel %vm223_vm10, 1.0, %v742_v38  ;;  %v1612_v50 = vld [vmem:[#allocation21_spill] sm:$0xff]  ;;  %v1613_v58 = vmax.f32 %v992_v35, 0.0 }
  0x47   :  { %1597 = vst [vmem:[#allocation34_spill] sm:$0xff] %v1186_v39  ;;  %1598 = vst [vmem:[#allocation35_spill] sm:$0xff] %v1194_v47  ;;  %v746_v32 = vpop.eup %745  ;;  %v1208_v6 = vadd.f32 1.0, %v744_v1  ;;  %771 = vrcp.f32 %v1186_v39  ;;  %v1214_v49 = vsel %vm224_vm11, 1.0, %v744_v1  ;;  %v1616_v38 = vmax.f32 %v1001_v40, 0.0 }
  0x48   :  { %1599 = vst [vmem:[#allocation36_spill] sm:$0xff] %v1196_v59  ;;  %v748_v56 = vpop.eup %747  ;;  %v1217_v20 = vadd.f32 1.0, %v746_v32  ;;  %773 = vrcp.f32 %v1196_v59  ;;  %v1222_v44 = vsel %vm225_vm12, 1.0, %v746_v32  ;;  %v1311_v34 = vsub.f32 %v1613_v58, %v1612_v50  ;;  %v1621_v58 = vld [vmem:[#allocation13_spill] sm:$0xff] }
  0x49   :  { %1600 = vst [vmem:[#allocation37_spill] sm:$0xff] %v1208_v6  ;;  %v750_v0 = vpop.eup %749  ;;  %v1225_v54 = vadd.f32 1.0, %v748_v56  ;;  %775 = vrcp.f32 %v1208_v6  ;;  %v1230_v12 = vsel %vm226_vm13, 1.0, %v748_v56 }
  0x4a   :  { %1601 = vst [vmem:[#allocation38_spill] sm:$0xff] %v1217_v20  ;;  %v752_v33 = vpop.eup %751  ;;  %v1233_v8 = vadd.f32 1.0, %v750_v0  ;;  %777 = vrcp.f32 %v1217_v20  ;;  %v1238_v28 = vsel %vm227_vm14, 1.0, %v750_v0  ;;  %1614 = vst [vmem:[#allocation21_spill] sm:$0xff] %v1311_v34 }
  0x4b   :  { %1602 = vst [vmem:[#allocation39_spill] sm:$0xff] %v1225_v54  ;;  %v754_v1 = vpop.eup %753  ;;  %v1241_v32 = vadd.f32 1.0, %v752_v33  ;;  %779 = vrcp.f32 %v1225_v54  ;;  %v1246_v56 = vsel %vm228_vm15, 1.0, %v752_v33 }
  0x4c   :  { %1603 = vst [vmem:[#allocation40_spill] sm:$0xff] %v1233_v8  ;;  %v756_v48 = vpop.eup %755  ;;  %v1249_v55 = vadd.f32 1.0, %v754_v1  ;;  %781 = vrcp.f32 %v1233_v8  ;;  %v1254_v0 = vsel %vm229_vm0, 1.0, %v754_v1 }
  0x4d   :  { %1604 = vst [vmem:[#allocation41_spill] sm:$0xff] %v1241_v32  ;;  %v758_v13 = vpop.eup %757  ;;  %v1257_v21 = vadd.f32 1.0, %v756_v48  ;;  %783 = vrcp.f32 %v1241_v32  ;;  %v1262_v33 = vsel %vm230_vm2, 1.0, %v756_v48 }
  0x4e   :  { %1605 = vst [vmem:[#allocation42_spill] sm:$0xff] %v1249_v55  ;;  %v760_v47 = vpop.eup %759  ;;  %v1265_v54 = vadd.f32 1.0, %v758_v13  ;;  %785 = vrcp.f32 %v1249_v55  ;;  %v1270_v1 = vsel %vm231_vm3, 1.0, %v758_v13 }
  0x4f   :  { %1606 = vst [vmem:[#allocation43_spill] sm:$0xff] %v1257_v21  ;;  %v762_v8 = vpop.eup %761  ;;  %v1273_v20 = vadd.f32 1.0, %v760_v47  ;;  %787 = vrcp.f32 %v1257_v21  ;;  %v1278_v48 = vsel %vm232_vm4, 1.0, %v760_v47 }
  0x50   :  { %1607 = vst [vmem:[#allocation44_spill] sm:$0xff] %v1265_v54  ;;  %v764_v32 = vpop.eup %763  ;;  %v1281_v6 = vadd.f32 1.0, %v762_v8  ;;  %789 = vrcp.f32 %v1265_v54  ;;  %v1286_v13 = vsel %vm233_vm5, 1.0, %v762_v8 }
  0x51   :  { %1608 = vst [vmem:[#allocation45_spill] sm:$0xff] %v1273_v20  ;;  %v766_v55 = vpop.eup %765  ;;  %v1289_v59 = vadd.f32 1.0, %v764_v32  ;;  %791 = vrcp.f32 %v1273_v20  ;;  %v1294_v47 = vsel %vm234_vm6, 1.0, %v764_v32 }
  0x52   :  { %1609 = vst [vmem:[#allocation46_spill] sm:$0xff] %v1281_v6  ;;  %v768_v21 = vpop.eup %767  ;;  %v1297_v39 = vadd.f32 1.0, %v766_v55  ;;  %793 = vrcp.f32 %v1281_v6  ;;  %v1302_v8 = vsel %vm235_vm7, 1.0, %v766_v55  ;;  %v1615_v6 = vld [vmem:[#allocation22_spill] sm:$0xff] }
  0x53   :  { %1610 = vst [vmem:[#allocation47_spill] sm:$0xff] %v1289_v59  ;;  %v770_v54 = vpop.eup %769  ;;  %795 = vrcp.f32 %v1289_v59  ;;  %v252_v20 = vmul.f32 %v768_v21, %v1183_v3  ;;  %v1318_v29 = vsub.f32 %v1616_v38, %v1615_v6  ;;  %v1618_v59 = vld [vmem:[#allocation23_spill] sm:$0xff]  ;;  %v1619_v21 = vmax.f32 %v1003_v41, 0.0 }
  0x54   :  { %1611 = vst [vmem:[#allocation48_spill] sm:$0xff] %v1297_v39  ;;  %v772_v42 = vpop.eup %771  ;;  %797 = vrcp.f32 %v1297_v39  ;;  %v253_v55 = vmul.f32 %v770_v54, %v1192_v51  ;;  %v1622_v39 = vld [vmem:[#allocation24_spill] sm:$0xff]  ;;  %v1623_v51 = vmax.f32 %v1011_v45, 0.0  ;;  %v1628_v45 = vld [vmem:[#allocation14_spill] sm:$0xff] }
  0x55   :  { %1617 = vst [vmem:[#allocation22_spill] sm:$0xff] %v1318_v29  ;;  %v1323_v3 = vsub.f32 %v1619_v21, %v1618_v59  ;;  %v774_v32 = vpop.eup %773  ;;  %v254_v35 = vmul.f32 %v772_v42, %v1202_v63  ;;  %v411_v50 = vsel %vm380_vm1, %v252_v20, 0.0  ;;  %v364_v34 = vmul.f32 %v252_v20, %v1621_v58  ;;  %v1625_v59 = vld [vmem:[#allocation25_spill] sm:$0xff] }
  0x56   :  { %v1331_v54 = vsub.f32 %v1623_v51, %v1622_v39  ;;  %v776_v40 = vpop.eup %775  ;;  %v255_v6 = vmul.f32 %v774_v32, %v1206_v57  ;;  %v426_v38 = vsel %vm380_vm1, %v253_v55, 0.0  ;;  %v1626_v21 = vmax.f32 %v1013_v46, 0.0  ;;  %v1629_v51 = vld [vmem:[#allocation15_spill] sm:$0xff] }
  0x57   :  { %1620 = vst [vmem:[#allocation23_spill] sm:$0xff] %v1323_v3  ;;  %v778_v63 = vpop.eup %777  ;;  %v256_v20 = vmul.f32 %v776_v40, %v1214_v49  ;;  %v412_v58 = vsel %vm380_vm1, %v254_v35, 0.0  ;;  %v1344_v39 = vmul.f32 %v253_v55, %v1628_v45  ;;  %v381_v46 = vsel %vm380_vm1, %v364_v34, 0.0 }
  0x58   :  { %1624 = vst [vmem:[#allocation13_spill] sm:$0xff] %v1331_v54  ;;  %v1339_v42 = vsub.f32 %v1626_v21, %v1625_v59  ;;  %v366_v54 = vmul.f32 %v254_v35, %v1629_v51  ;;  %v780_v57 = vpop.eup %779  ;;  %v257_v32 = vmul.f32 %v778_v63, %v1222_v44  ;;  %v413_v3 = vadd.f32 %v412_v58, %v411_v50  ;;  %v1631_v50 = vld [vmem:[#allocation17_spill] sm:$0xff] }
  0x59   :  { %v427_v41 = vsel %vm380_vm1, %v255_v6, 0.0  ;;  %v782_v59 = vpop.eup %781  ;;  %v258_v21 = vmul.f32 %v780_v57, %v1230_v12  ;;  %v414_v49 = vsel %vm380_vm1, %v256_v20, 0.0  ;;  %v368_v63 = vmul.f32 %v256_v20, %v1631_v50  ;;  %v1632_v57 = vld [vmem:[#allocation18_spill] sm:$0xff] }
  0x5a   :  { %1627 = vst [vmem:[#allocation24_spill] sm:$0xff] %v1339_v42  ;;  %v428_v40 = vadd.f32 %v427_v41, %v426_v38  ;;  %v1630_v42 = vld [vmem:[#allocation16_spill] sm:$0xff]  ;;  %v784_v55 = vpop.eup %783  ;;  %v259_v35 = vmul.f32 %v782_v59, %v1238_v28  ;;  %v415_v45 = vadd.f32 %v414_v49, %v413_v3  ;;  %v429_v44 = vsel %vm380_vm1, %v257_v32, 0.0  ;;  %v1633_v28 = vld [vmem:[#allocation19_spill] sm:$0xff] }
  0x5b   :  { %v1353_v29 = vmul.f32 %v255_v6, %v1630_v42  ;;  %v786_v58 = vpop.eup %785  ;;  %v260_v34 = vmul.f32 %v784_v55, %v1246_v56  ;;  %v416_v51 = vsel %vm380_vm1, %v258_v21, 0.0  ;;  %v369_v37 = vmul.f32 %v257_v32, %v1632_v57 }
  0x5c   :  { %v430_v12 = vadd.f32 %v429_v44, %v428_v40  ;;  %v788_v38 = vpop.eup %787  ;;  %v261_v6 = vmul.f32 %v786_v58, %v1254_v0  ;;  %v417_v41 = vadd.f32 %v416_v51, %v415_v45  ;;  %v431_v42 = vsel %vm380_vm1, %v259_v35, 0.0 }
  0x5d   :  { %v370_v3 = vmul.f32 %v258_v21, %v1633_v28  ;;  %v790_v59 = vpop.eup %789  ;;  %v262_v49 = vmul.f32 %v788_v38, %v1262_v33  ;;  %v418_v20 = vsel %vm380_vm1, %v260_v34, 0.0  ;;  %v371_v56 = vmul.f32 %v259_v35, %v958_v16 }
  0x5e   :  { %v432_v50 = vadd.f32 %v431_v42, %v430_v12  ;;  %v792_v55 = vpop.eup %791  ;;  %v263_v40 = vmul.f32 %v790_v59, %v1270_v1  ;;  %v419_v32 = vadd.f32 %v418_v20, %v417_v41  ;;  %v433_v44 = vsel %vm380_vm1, %v261_v6, 0.0 }
  0x5f   :  { %v372_v0 = vmul.f32 %v260_v34, %v960_v17  ;;  %v794_v45 = vpop.eup %793  ;;  %v264_v58 = vmul.f32 %v792_v55, %v1278_v48  ;;  %v420_v21 = vsel %vm380_vm1, %v262_v49, 0.0  ;;  %v373_v33 = vmul.f32 %v261_v6, %v968_v22 }
  0x60   :  { %v434_v51 = vadd.f32 %v433_v44, %v432_v50  ;;  %v796_v57 = vpop.eup %795  ;;  %v265_v12 = vmul.f32 %v794_v45, %v1286_v13  ;;  %v421_v16 = vadd.f32 %v420_v21, %v419_v32  ;;  %v435_v35 = vsel %vm380_vm1, %v263_v40, 0.0  ;;  %v1634_v32 = vld [vmem:[#allocation20_spill] sm:$0xff] }
  0x61   :  { %v374_v1 = vmul.f32 %v262_v49, %v970_v23  ;;  %v798_v38 = vpop.eup %797  ;;  %v266_v41 = vmul.f32 %v796_v57, %v1294_v47  ;;  %v422_v17 = vsel %vm380_vm1, %v264_v58, 0.0  ;;  %v375_v48 = vmul.f32 %v263_v40, %v972_v24 }
  0x62   :  { %v436_v34 = vadd.f32 %v435_v35, %v434_v51  ;;  %v267_v42 = vmul.f32 %v798_v38, %v1302_v8  ;;  %v423_v28 = vadd.f32 %v422_v17, %v421_v16  ;;  %v437_v22 = vsel %vm380_vm1, %v265_v12, 0.0 }
  0x63   :  { %v376_v13 = vmul.f32 %v264_v58, %v984_v30  ;;  %v424_v6 = vsel %vm380_vm1, %v266_v41, 0.0  ;;  %v377_v23 = vmul.f32 %v265_v12, %v986_v31  ;;  %v382_v49 = vsel %vm380_vm1, %v366_v54, 0.0  ;;  %v1635_v58 = vld [vmem:[#allocation28_spill] sm:$0xff] }
  0x64   :  { %v438_v59 = vadd.f32 %v437_v22, %v436_v34  ;;  %v425_v47 = vadd.f32 %v424_v6, %v423_v28  ;;  %v439_v20 = vsel %vm380_vm1, %v267_v42, 0.0  ;;  %v378_v50 = vmul.f32 %v266_v41, %v995_v36 }
  0x65   :  { %v383_v24 = vadd.f32 %v382_v49, %v381_v46  ;;  %v379_v8 = vmul.f32 %v267_v42, %v1009_v43  ;;  %v384_v40 = vsel %vm380_vm1, %v368_v63, 0.0  ;;  %v386_v30 = vsel %vm380_vm1, %v370_v3, 0.0 }
  0x66   :  { %v440_v55 = vadd.f32 %v439_v20, %v438_v59  ;;  %v547_v44 = vmul.f32 %v1634_v32, %v425_v47  ;;  %v388_v31 = vsel %vm380_vm1, %v372_v0, 0.0  ;;  %v390_v54 = vsel %vm380_vm1, %v374_v1, 0.0 }
  0x67   :  { %v385_v45 = vadd.f32 %v384_v40, %v383_v24  ;;  %v392_v51 = vsel %vm380_vm1, %v376_v13, 0.0  ;;  %v396_v36 = vsel %vm380_vm1, %v1344_v39, 0.0  ;;  %v397_v43 = vsel %vm380_vm1, %v1353_v29, 0.0 }
  0x68   :  { %v548_v21 = vmul.f32 %v1635_v58, %v440_v55  ;;  %v549_v46 = vsel %vm380_vm1, %v547_v44, 0.0  ;;  %v398_v3 = vadd.f32 %v397_v43, %v396_v36  ;;  %v399_v57 = vsel %vm380_vm1, %v369_v37, 0.0  ;;  %v1636_v37 = vld [vmem:[#allocation26_spill] sm:$0xff]  ;;  %v1655_v43 = vld [vmem:[#allocation36_spill] sm:$0xff] }
  0x69   :  { %v387_v63 = vadd.f32 %v386_v30, %v385_v45  ;;  %v394_v12 = vsel %vm380_vm1, %v378_v50, 0.0  ;;  %v401_v16 = vsel %vm380_vm1, %v371_v56, 0.0  ;;  %v403_v35 = vsel %vm380_vm1, %v373_v33, 0.0  ;;  %v1638_v33 = vld [vmem:[#allocation27_spill] sm:$0xff]  ;;  %v1647_v44 = vld [vmem:[#allocation30_spill] sm:$0xff] }
  0x6a   :  { %v550_v0 = vsel %vm380_vm1, %v548_v21, 0.0  ;;  %v400_v39 = vadd.f32 %v399_v57, %v398_v3  ;;  %v405_v41 = vsel %vm380_vm1, %v375_v48, 0.0  ;;  %v407_v29 = vsel %vm380_vm1, %v377_v23, 0.0  ;;  %v1654_v36 = vld [vmem:[#allocation34_spill] sm:$0xff] }
  0x6b   :  { %v551_v1 = vadd.f32 %v550_v0, %v549_v46  ;;  %v389_v38 = vadd.f32 %v388_v31, %v387_v63  ;;  %v601_v17 = vmul.f32 %v932_v4, %v425_v47  ;;  %v602_v34 = vmul.f32 %v1165_v25, %v440_v55  ;;  %v1656_v63 = vld [vmem:[#allocation37_spill] sm:$0xff]  ;;  %v1657_v57 = vld [vmem:[#allocation38_spill] sm:$0xff] }
  0x6c   :  { %v1637_v42 = vmax.f32 %v1032_v52, 0.0  ;;  %v402_v22 = vadd.f32 %v401_v16, %v400_v39  ;;  %v1639_v13 = vmax.f32 %v1034_v53, 0.0  ;;  %v1640_v48 = vmax.f32 %v1049_v60, 0.0 }
  0x6d   :  { %552 = vadd.xlane.f32.xlu0 %v551_v1  ;;  %v391_v56 = vadd.f32 %v390_v54, %v389_v38  ;;  %v603_v23 = vsel %vm380_vm1, %v601_v17, 0.0  ;;  %v604_v49 = vsel %vm380_vm1, %v602_v34, 0.0  ;;  %v1641_v52 = vmax.f32 %v1051_v61, 0.0  ;;  %v1660_v1 = vld [vmem:[#allocation41_spill] sm:$0xff]  ;;  %v1665_v34 = vld [vmem:[#allocation46_spill] sm:$0xff] }
  0x6e   :  { %v1412_v28 = vsub.f32 %v1637_v42, %v1636_v37  ;;  %v1417_v6 = vsub.f32 %v1639_v13, %v1638_v33  ;;  %v1422_v59 = vsub.f32 %v1640_v48, %v1118_v2  ;;  %v1642_v20 = vmax.f32 %v1053_v62, 0.0  ;;  %v1667_v33 = vld [vmem:[#allocation35_spill] sm:$0xff]  ;;  %v1668_v48 = vld [vmem:[#allocation48_spill] sm:$0xff] }
  0x6f   :  { %v1429_v47 = vsub.f32 %v1641_v52, %v1122_v5  ;;  %v393_v50 = vadd.f32 %v392_v51, %v391_v56  ;;  %v404_v24 = vadd.f32 %v403_v35, %v402_v22  ;;  %v605_v55 = vadd.f32 %v604_v49, %v603_v23  ;;  %v1653_v51 = vld [vmem:[#allocation33_spill] sm:$0xff]  ;;  %v1666_v56 = vld [vmem:[#allocation47_spill] sm:$0xff] }
  0x70   :  { %v1434_v53 = vsub.f32 %v1642_v20, %v1126_v11  ;;  %v1643_v60 = vmax.f32 %v1063_v14, 0.0  ;;  %v1644_v40 = vmax.f32 %v1065_v18, 0.0  ;;  %v1645_v61 = vmax.f32 %v1067_v19, 0.0  ;;  %v1649_v18 = vld [vmem:[#allocation31_spill] sm:$0xff]  ;;  %v1652_v19 = vld [vmem:[#allocation32_spill] sm:$0xff]  ;;  %v1669_v52 = vld [vmem:[#allocation21_spill] sm:$0xff] }
  0x71   :  { %v1646_v62 = vmax.f32 %v1078_v26, 0.0  ;;  %v1648_v14 = vmax.f32 %v1080_v27, 0.0  ;;  %v395_v45 = vadd.f32 %v394_v12, %v393_v50  ;;  %v406_v31 = vadd.f32 %v405_v41, %v404_v24  ;;  %v1661_v41 = vld [vmem:[#allocation42_spill] sm:$0xff] }
  0x72   :  { %v1439_v2 = vsub.f32 %v1643_v60, %v1130_v9  ;;  %v1444_v30 = vsub.f32 %v1644_v40, %v1134_v7  ;;  %v1449_v5 = vsub.f32 %v1645_v61, %v1138_v10  ;;  %v1650_v7 = vld [vmem:[#allocation29_spill] sm:$0xff]  ;;  %799 = vlog2.f32 %v1652_v19  ;;  %v1670_v60 = vld [vmem:[#allocation22_spill] sm:$0xff] }
  0x73   :  { %v1454_v11 = vsub.f32 %v1646_v62, %v1142_v15  ;;  %v1459_v9 = vsub.f32 %v1648_v14, %v1647_v44  ;;  %v1651_v54 = vmax.f32 %v1650_v7, 0.0  ;;  %v409_v10 = vsel %vm380_vm1, %v379_v8, 0.0  ;;  %v1671_v44 = vld [vmem:[#allocation23_spill] sm:$0xff] }
  0x74   :  { %801 = vlog2.f32 %v1653_v51  ;;  %v408_v26 = vadd.f32 %v407_v29, %v406_v31  ;;  %v583_v15 = vmul.f32 %v932_v4, %v395_v45  ;;  %v529_v27 = vmul.f32 %v1634_v32, %v395_v45  ;;  %v1658_v4 = vld [vmem:[#allocation39_spill] sm:$0xff]  ;;  %v1659_v32 = vld [vmem:[#allocation40_spill] sm:$0xff] }
  0x75   :  { %v1464_v21 = vsub.f32 %v1651_v54, %v1649_v18  ;;  %803 = vlog2.f32 %v1654_v36  ;;  %v1662_v29 = vld [vmem:[#allocation43_spill] sm:$0xff]  ;;  %v1673_v51 = vld [vmem:[#allocation24_spill] sm:$0xff] }
  0x76   :  { %805 = vlog2.f32 %v1655_v43  ;;  %v410_v46 = vadd.f32 %v409_v10, %v408_v26  ;;  %v585_v3 = vsel %vm380_vm1, %v583_v15, 0.0  ;;  %v531_v12 = vsel %vm380_vm1, %v529_v27, 0.0 }
  0x77   :  { %807 = vlog2.f32 %v1656_v63 }
  0x78   :  { %809 = vlog2.f32 %v1657_v57  ;;  %v584_v8 = vmul.f32 %v1165_v25, %v410_v46  ;;  %v530_v0 = vmul.f32 %v1635_v58, %v410_v46  ;;  %v1663_v25 = vld [vmem:[#allocation44_spill] sm:$0xff]  ;;  %v1664_v58 = vld [vmem:[#allocation45_spill] sm:$0xff] }
  0x79   :  { %811 = vlog2.f32 %v1658_v4 }
  0x7a   :  { %813 = vlog2.f32 %v1659_v32  ;;  %v586_v16 = vsel %vm380_vm1, %v584_v8, 0.0  ;;  %v532_v35 = vsel %vm380_vm1, %v530_v0, 0.0 }
  0x7b   :  { %815 = vlog2.f32 %v1660_v1  ;;  %v587_v38 = vadd.f32 %v586_v16, %v585_v3  ;;  %v533_v39 = vadd.f32 %v532_v35, %v531_v12 }
  0x7c   :  { %817 = vlog2.f32 %v1661_v41 }
  0x7d   :  { %819 = vlog2.f32 %v1662_v29  ;;  %588 = vadd.xlane.f32.xlu1 %v587_v38  ;;  %534 = vadd.xlane.f32.xlu0 %v533_v39 }
  0x7e   :  { %821 = vlog2.f32 %v1663_v25 }
  0x7f   :  { %823 = vlog2.f32 %v1664_v58  ;;  %v800_v17 = vpop.eup %799 }
  0x80   :  { %825 = vlog2.f32 %v1665_v34  ;;  %v317_v42 = vmul.f32 0.6931472, %v800_v17 }
  0x81   :  { %v802_v37 = vpop.eup %801  ;;  %827 = vlog2.f32 %v1666_v56  ;;  %624 = vadd.xlane.f32.xlu1 %v1667_v33  ;;  %606 = vadd.xlane.f32.xlu0 %v605_v55  ;;  %v1672_v55 = vld [vmem:[#allocation13_spill] sm:$0xff] }
  0x82   :  { %v804_v22 = vpop.eup %803  ;;  %v319_v13 = vmul.f32 0.6931472, %v802_v37  ;;  %829 = vlog2.f32 %v1668_v48  ;;  %v348_v20 = vadd.f32 %v317_v42, %v1669_v52 }
  0x83   :  { %v806_v23 = vpop.eup %805  ;;  %v321_v49 = vmul.f32 0.6931472, %v804_v22 }
  0x84   :  { %v808_v50 = vpop.eup %807  ;;  %v323_v24 = vmul.f32 0.6931472, %v806_v23  ;;  %v349_v40 = vadd.f32 %v319_v13, %v1670_v60  ;;  %v471_v45 = vsel %vm380_vm1, %v348_v20, 0.0 }
  0x85   :  { %v810_v61 = vpop.eup %809  ;;  %v325_v62 = vmul.f32 0.6931472, %v808_v50  ;;  %v350_v14 = vadd.f32 %v321_v49, %v1671_v44 }
  0x86   :  { %v812_v31 = vpop.eup %811  ;;  %v327_v18 = vmul.f32 0.6931472, %v810_v61  ;;  %v351_v7 = vadd.f32 %v323_v24, %v1672_v55  ;;  %v486_v54 = vsel %vm380_vm1, %v349_v40, 0.0 }
  0x87   :  { %v814_v19 = vpop.eup %813  ;;  %v329_v10 = vmul.f32 0.6931472, %v812_v31  ;;  %v352_v26 = vadd.f32 %v325_v62, %v1673_v51  ;;  %v472_v15 = vsel %vm380_vm1, %v350_v14, 0.0 }
  0x88   :  { %v816_v27 = vpop.eup %815  ;;  %v331_v36 = vmul.f32 0.6931472, %v814_v19  ;;  %v353_v43 = vadd.f32 %v327_v18, %v1412_v28  ;;  %v473_v46 = vadd.f32 %v472_v15, %v471_v45  ;;  %v487_v63 = vsel %vm380_vm1, %v351_v7, 0.0 }
  0x89   :  { %v818_v3 = vpop.eup %817  ;;  %v333_v57 = vmul.f32 0.6931472, %v816_v27  ;;  %v354_v8 = vadd.f32 %v329_v10, %v1417_v6  ;;  %v474_v0 = vsel %vm380_vm1, %v352_v26, 0.0  ;;  %v488_v12 = vadd.f32 %v487_v63, %v486_v54 }
  0x8a   :  { %v820_v4 = vpop.eup %819  ;;  %v335_v32 = vmul.f32 0.6931472, %v818_v3  ;;  %v355_v16 = vadd.f32 %v331_v36, %v1422_v59  ;;  %v475_v35 = vadd.f32 %v474_v0, %v473_v46  ;;  %v489_v1 = vsel %vm380_vm1, %v353_v43, 0.0 }
  0x8b   :  { %v822_v38 = vpop.eup %821  ;;  %v337_v39 = vmul.f32 0.6931472, %v820_v4  ;;  %v356_v28 = vadd.f32 %v333_v57, %v1429_v47  ;;  %v476_v41 = vsel %vm380_vm1, %v354_v8, 0.0  ;;  %v490_v29 = vadd.f32 %v489_v1, %v488_v12 }
  0x8c   :  { %v824_v25 = vpop.eup %823  ;;  %v339_v58 = vmul.f32 0.6931472, %v822_v38  ;;  %v357_v6 = vadd.f32 %v335_v32, %v1434_v53  ;;  %v477_v17 = vadd.f32 %v476_v41, %v475_v35  ;;  %v491_v34 = vsel %vm380_vm1, %v355_v16, 0.0 }
  0x8d   :  { %v826_v37 = vpop.eup %825  ;;  %v341_v42 = vmul.f32 0.6931472, %v824_v25  ;;  %v358_v59 = vadd.f32 %v337_v39, %v1439_v2  ;;  %v478_v56 = vsel %vm380_vm1, %v356_v28, 0.0  ;;  %v492_v22 = vadd.f32 %v491_v34, %v490_v29 }
  0x8e   :  { %v828_v33 = vpop.eup %827  ;;  %v343_v13 = vmul.f32 0.6931472, %v826_v37  ;;  %v359_v47 = vadd.f32 %v339_v58, %v1444_v30  ;;  %v479_v48 = vadd.f32 %v478_v56, %v477_v17  ;;  %v493_v23 = vsel %vm380_vm1, %v357_v6, 0.0 }
  0x8f   :  { %v830_v49 = vpop.eup %829  ;;  %v345_v52 = vmul.f32 0.6931472, %v828_v33  ;;  %v360_v53 = vadd.f32 %v341_v42, %v1449_v5  ;;  %v480_v20 = vsel %vm380_vm1, %v358_v59, 0.0  ;;  %v494_v50 = vadd.f32 %v493_v23, %v492_v22 }
  0x90   :  { %v347_v24 = vmul.f32 0.6931472, %v830_v49  ;;  %v361_v2 = vadd.f32 %v343_v13, %v1454_v11  ;;  %v481_v60 = vadd.f32 %v480_v20, %v479_v48  ;;  %v495_v40 = vsel %vm380_vm1, %v359_v47, 0.0 }
  0x91   :  { %v362_v61 = vadd.f32 %v345_v52, %v1459_v9  ;;  %v482_v30 = vsel %vm380_vm1, %v360_v53, 0.0  ;;  %v496_v62 = vadd.f32 %v495_v40, %v494_v50  ;;  %v1674_v40 = vld [vmem:[#allocation12_spill] sm:$0xff] }
  0x92   :  { %v363_v44 = vadd.f32 %v347_v24, %v1464_v21  ;;  %v483_v14 = vadd.f32 %v482_v30, %v481_v60  ;;  %v497_v45 = vsel %vm380_vm1, %v361_v2, 0.0  ;;  %vm658_vm8 = vcmp.eq.s32.totalorder %v1674_v40, 1 }
  0x93   :  { %v484_v5 = vsel %vm380_vm1, %v362_v61, 0.0  ;;  %v498_v31 = vadd.f32 %v497_v45, %v496_v62  ;;  %vm662_vm9 = vcmp.eq.s32.totalorder %v1674_v40, 2  ;;  %vm666_vm10 = vcmp.eq.s32.totalorder %v1674_v40, 3 }
  0x94   :  { %v485_v18 = vadd.f32 %v484_v5, %v483_v14  ;;  %v499_v55 = vsel %vm380_vm1, %v363_v44, 0.0  ;;  %vm670_vm11 = vcmp.eq.s32.totalorder %v1674_v40, 4  ;;  %vm674_vm12 = vcmp.eq.s32.totalorder %v1674_v40, 5 }
  0x95   :  { %v500_v11 = vadd.f32 %v499_v55, %v498_v31  ;;  %vm678_vm13 = vcmp.eq.s32.totalorder %v1674_v40, 6 }
  0x96   :  { %v637_v7 = vsel %vm380_vm1, %v485_v18, 0.0 }
  0x97   :  { %v638_v54 = vsel %vm380_vm1, %v500_v11, 0.0  ;;  %vm654_vm1 = vcmp.eq.s32.totalorder %v1674_v40, 0 }
  0x98   :  { %v639_v9 = vadd.f32 %v638_v54, %v637_v7 }
  0x9a   :  { %640 = vadd.xlane.f32.xlu0 %v639_v9 }
  0xbe   :  { %v571_v19 = vpop.xlane.xlu1 %570 }
  0xbf   :  { %v572_v51 = vrot.slane %v571_v19, 4 }
  0xc1   :  { %v573_v26 = vadd.f32 %v572_v51, %v571_v19 }
  0xc3   :  { %v574_v27 = vrot.slane %v573_v26, 2 }
  0xc5   :  { %v575_v32 = vadd.f32 %v574_v27, %v573_v26 }
  0xc7   :  { %v576_v34 = vrot.slane %v575_v32, 1 }
  0xc9   :  { %v577_v33 = vadd.f32 %v576_v34, %v575_v32 }
  0xf6   :  { %v553_v10 = vpop.xlane.xlu0 %552 }
  0xf7   :  { %v554_v21 = vrot.slane %v553_v10, 4 }
  0xf9   :  { %v555_v15 = vadd.f32 %v554_v21, %v553_v10 }
  0xfb   :  { %v556_v36 = vrot.slane %v555_v15, 2 }
  0xfd   :  { %v557_v4 = vadd.f32 %v556_v36, %v555_v15 }
  0xff   :  { %v558_v25 = vrot.slane %v557_v4, 1 }
 0x101   :  { %v559_v22 = vadd.f32 %v558_v25, %v557_v4 }
 0x106   :  { %v589_v43 = vpop.xlane.xlu1 %588  ;;  %v535_v46 = vpop.xlane.xlu0 %534 }
 0x107   :  { %v590_v63 = vrot.slane %v589_v43, 4  ;;  %v536_v3 = vrot.slane %v535_v46, 4 }
 0x109   :  { %v591_v57 = vadd.f32 %v590_v63, %v589_v43  ;;  %v537_v8 = vadd.f32 %v536_v3, %v535_v46 }
 0x10a   :  { %v625_v0 = vpop.xlane.xlu1 %624  ;;  %v607_v12 = vpop.xlane.xlu0 %606 }
 0x10b   :  { %v592_v16 = vrot.slane %v591_v57, 2  ;;  %v538_v35 = vrot.slane %v537_v8, 2  ;;  %v626_v1 = vrot.slane %v625_v0, 4  ;;  %v608_v38 = vrot.slane %v607_v12, 4 }
 0x10d   :  { %v627_v39 = vadd.f32 %v626_v1, %v625_v0  ;;  %v609_v28 = vadd.f32 %v608_v38, %v607_v12  ;;  %v539_v41 = vadd.f32 %v538_v35, %v537_v8  ;;  %v593_v29 = vadd.f32 %v592_v16, %v591_v57 }
 0x10f   :  { %v628_v58 = vrot.slane %v627_v39, 2  ;;  %v610_v6 = vrot.slane %v609_v28, 2  ;;  %v540_v17 = vrot.slane %v539_v41, 1  ;;  %v594_v37 = vrot.slane %v593_v29, 1 }
 0x111   :  { %v629_v42 = vadd.f32 %v628_v58, %v627_v39  ;;  %v541_v59 = vadd.f32 %v540_v17, %v539_v41  ;;  %v611_v56 = vadd.f32 %v610_v6, %v609_v28  ;;  %v595_v48 = vadd.f32 %v594_v37, %v593_v29 }
 0x113   :  { %715 = vpush %v541_v59  ;;  %v612_v13 = vrot.slane %v611_v56, 1  ;;  %v630_v47 = vrot.slane %v629_v42, 1 }
 0x114   :  { %717 = vpush %v559_v22 }
 0x115   :  { %719 = vpush %v577_v33  ;;  %v613_v23 = vadd.f32 %v612_v13, %v611_v56  ;;  %v631_v49 = vadd.f32 %v630_v47, %v629_v42 }
 0x116   :  { %721 = vpush %v595_v48 }
 0x117   :  { %723 = vpush %v613_v23 }
 0x118   :  { %725 = vpush %v631_v49 }
 0x123   :  { %v641_v52 = vpop.xlane.xlu0 %640 }
 0x124   :  { %v642_v53 = vrot.slane %v641_v52, 4 }
 0x126   :  { %v643_v20 = vadd.f32 %v642_v53, %v641_v52 }
 0x128   :  { %v644_v50 = vrot.slane %v643_v20, 2 }
 0x12a   :  { %v645_v24 = vadd.f32 %v644_v50, %v643_v20 }
 0x12c   :  { %v646_v2 = vrot.slane %v645_v24, 1 }
 0x12e   :  { %v647_v60 = vadd.f32 %v646_v2, %v645_v24 }
 0x130   :  { %727 = vpush %v647_v60 }
 0x144   :  { %s716_s0 = spop %715 }
 0x145   :  { %v656_v61 = vstv %s716_s0  ;;  %s718_s1 = spop %717 }
 0x146   :  { %v657_v30 = vsel %vm654_vm1, %v656_v61, 0.0  ;;  %v660_v62 = vstv %s718_s1  ;;  %s720_s21 = spop %719 }
 0x147   :  { %v661_v44 = vsel %vm658_vm8, %v660_v62, %v657_v30  ;;  %v664_v14 = vstv %s720_s21  ;;  %s722_s22 = spop %721 }
 0x148   :  { %v665_v45 = vsel %vm662_vm9, %v664_v14, %v661_v44  ;;  %s724_s23 = spop %723  ;;  %v668_v5 = vstv %s722_s22 }
 0x149   :  { %v669_v31 = vsel %vm666_vm10, %v668_v5, %v665_v45  ;;  %v672_v18 = vstv %s724_s23  ;;  %s726_s24 = spop %725 }
 0x14a   :  { %v673_v55 = vsel %vm670_vm11, %v672_v18, %v669_v31  ;;  %v676_v11 = vstv %s726_s24 }
 0x14b   :  { %v677_v7 = vsel %vm674_vm12, %v676_v11, %v673_v55 }
 0x161   :  { %s728_s27 = spop %727 }
 0x162   :  { %v680_v54 = vstv %s728_s27 }
 0x163   :  { %v681_v9 = vsel %vm678_vm13, %v680_v54, %v677_v7 }
 0x164   :  { %682 = vst [vmem:[#allocation8] sm:$0xff] %v681_v9 }
 0x165   :  { %882 = shalt.err (!%p879_p0)
}
 0x166   :  { %692 = dma.vmem_to_hbm [thread:$0]  %s690_s26, 128, %s1538_s2, [#allocation5]  }
 0x167   :  { %895 = dma.done.wait [#allocation5], 128  }
 0x168   :  { %896 = vsyncadd [#allocation5], 4294967168 }
 0x169   :  { %696 = vsyncpa [#allocation4], 1 }
 0x16a   :  { %697 = vsyncpa [#allocation7], 1 }
 0x16b   :  { %698 = vsyncpa [#allocation5], 1 }

</bundles_post_ra>
